<compile_context>
chip_gen: v7x
topology: tpu7x:2x2x1
jax: 0.10.0
libtpu: 0.0.40
codegen_flags: <defaults>
</compile_context>

<pallas_src>
import functools

import jax
import jax.numpy as jnp
from jax import lax
from jax.experimental import pallas as pl
from jax.experimental.pallas import tpu as pltpu


def _cgi_mh_kernel(vx_ref, tx_ref, wq_ref, bq_ref, wk_ref, bk_ref,
                   wv_ref, bv_ref, wp_ref, bp_ref, out_ref,
                   *, num_heads, head_dim, scale):
    # vx_ref : (C, TN)   one batch element, one N-tile (lane-dense in N)
    # tx_ref : (C, T)    text features for this batch element
    # wq/wk/wv/wp : (C, C) 1x1-conv weights; b* : (C, 1) biases
    # out_ref: (C, TN)
    vx = vx_ref[...]
    tx = tx_ref[...]

    # 1x1 convs as single deep-K MXU matmuls, f32 accumulation.
    q = jnp.dot(wq_ref[...], vx, preferred_element_type=jnp.float32) + bq_ref[...]
    k = jnp.dot(wk_ref[...], tx, preferred_element_type=jnp.float32) + bk_ref[...]
    v = jnp.dot(wv_ref[...], tx, preferred_element_type=jnp.float32) + bv_ref[...]

    heads = []
    for hh in range(num_heads):                      # static unrolled loop
        lo = hh * head_dim
        qh = q[lo:lo + head_dim, :]                  # (dh, TN)
        kh = k[lo:lo + head_dim, :]                  # (dh, T)
        vh = v[lo:lo + head_dim, :]                  # (dh, T)

        # scores stored transposed: s[t, n] = sum_d kh[d, t] * qh[d, n]
        # -> (T, TN), lane-dense in N; softmax reduces over sublanes (T).
        s = lax.dot_general(kh, qh, (((0,), (0,)), ((), ())),
                            preferred_element_type=jnp.float32) * scale
        s = s - jnp.max(s, axis=0, keepdims=True)
        e = jnp.exp(s)
        a = e / jnp.sum(e, axis=0, keepdims=True)    # softmax over T

        # out_h[d, n] = sum_t vh[d, t] * a[t, n]
        heads.append(jnp.dot(vh, a, preferred_element_type=jnp.float32))

    o = jnp.concatenate(heads, axis=0)               # (C, TN)

    out = jnp.dot(wp_ref[...], o, preferred_element_type=jnp.float32) + bp_ref[...]
    out_ref[...] = out.astype(out_ref.dtype)


def _pick_n_tile(n, pref=512):
    """Largest lane-friendly tile of N: multiple of 128 dividing N, else N."""
    if n % 128 != 0 or n <= pref:
        return n
    for t in range(pref, 0, -128):
        if n % t == 0:
            return t
    return n


def cgi_mh(Vx, Tx, params, num_heads):
    """Forward pass of CGI_MH. Returns (B, C, H, W)."""
    B, C, H, W = Vx.shape
    N = H * W
    T = Tx.shape[-1]
    dh = C // num_heads
    scale = float(dh) ** (-0.5)

    # ----- parameter repacking (once, outside the kernel) -----
    wq = params["q_w"].reshape(C, C)
    bq = params["q_b"].reshape(C, 1)
    wp = params["proj_w"].reshape(C, C)
    bp = params["proj_b"].reshape(C, 1)

    # kv Conv1d produces, per head, 2*dh channels: first dh -> key, next dh -> value.
    wkv = params["kv_w"].reshape(2 * C, C)
    bkv = params["kv_b"]
    wkv_r = wkv.reshape(num_heads, 2 * dh, C)
    bkv_r = bkv.reshape(num_heads, 2 * dh)
    wk = wkv_r[:, :dh, :].reshape(C, C)
    wv = wkv_r[:, dh:, :].reshape(C, C)
    bk = bkv_r[:, :dh].reshape(C, 1)
    bv = bkv_r[:, dh:].reshape(C, 1)

    vx_flat = Vx.reshape(B, C, N)

    tn = _pick_n_tile(N)
    grid = (B, N // tn)

    kernel = functools.partial(_cgi_mh_kernel, num_heads=num_heads,
                               head_dim=dh, scale=scale)

    # Rough VMEM budget from actual block sizes (double-buffered inputs/output
    # plus live f32 intermediates), clamped to a safe range.
    block_bytes = 4 * (C * tn + C * T + 4 * C * C + 4 * C      # input blocks
                       + C * tn                                # output block
                       + 3 * C * tn                            # q + o + proj temp
                       + 2 * num_heads * T * tn)               # scores/softmax
    vmem_limit = int(min(64 << 20, max(3 * block_bytes, 32 << 20)))

    out = pl.pallas_call(
        kernel,
        out_shape=jax.ShapeDtypeStruct((B, C, N), Vx.dtype),
        grid=grid,
        in_specs=[
            pl.BlockSpec((None, C, tn), lambda b, i: (b, 0, i)),   # Vx tile
            pl.BlockSpec((None, C, T), lambda b, i: (b, 0, 0)),    # Tx
            pl.BlockSpec((C, C), lambda b, i: (0, 0)),             # wq
            pl.BlockSpec((C, 1), lambda b, i: (0, 0)),             # bq
            pl.BlockSpec((C, C), lambda b, i: (0, 0)),             # wk
            pl.BlockSpec((C, 1), lambda b, i: (0, 0)),             # bk
            pl.BlockSpec((C, C), lambda b, i: (0, 0)),             # wv
            pl.BlockSpec((C, 1), lambda b, i: (0, 0)),             # bv
            pl.BlockSpec((C, C), lambda b, i: (0, 0)),             # wp
            pl.BlockSpec((C, 1), lambda b, i: (0, 0)),             # bp
        ],
        out_specs=pl.BlockSpec((None, C, tn), lambda b, i: (b, 0, i)),
        compiler_params=pltpu.CompilerParams(
            dimension_semantics=("parallel", "parallel"),
            vmem_limit_bytes=vmem_limit),
    )(vx_flat, Tx, wq, bq, wk, bk, wv, bv, wp, bp)

    return out.reshape(B, C, H, W)


def _reference(Vx, Tx, params, num_heads):
    """Pure-JAX reference of the PyTorch forward."""
    B, C, H, W = Vx.shape
    N = H * W
    T = Tx.shape[-1]
    dh = C // num_heads
    scale = float(dh) ** (-0.5)
    hp = lax.Precision.HIGHEST

    wq = params["q_w"].reshape(C, C)
    wkv = params["kv_w"].reshape(2 * C, C)
    wp = params["proj_w"].reshape(C, C)

    vq = jnp.einsum("oc,bcn->bon", wq, Vx.reshape(B, C, N), precision=hp)
    vq = vq + params["q_b"][None, :, None]
    kv = jnp.einsum("oc,bct->bot", wkv, Tx, precision=hp)
    kv = kv + params["kv_b"][None, :, None]

    vq = vq.reshape(B, num_heads, dh, N)
    kv = kv.reshape(B, num_heads, 2 * dh, T)
    tk, tv = kv[:, :, :dh, :], kv[:, :, dh:, :]

    attn = jnp.einsum("bhdn,bhdt->bhnt", vq, tk, precision=hp) * scale
    attn = jax.nn.softmax(attn, axis=-1)
    out = jnp.einsum("bhdt,bhnt->bhdn", tv, attn, precision=hp)
    out = out.reshape(B, C, N)
    out = jnp.einsum("oc,bcn->bon", wp, out, precision=hp)
    out = out + params["proj_b"][None, :, None]
    return out.reshape(B, C, H, W)


if __name__ == "__main__":
    B, C, H, W, T, NUM_HEADS = 2, 32, 8, 8, 8, 4   # dim=32, N=64, text len=8

    key = jax.random.PRNGKey(0)
    kvx, ktx, kq, kqb, kkv, kkvb, kp, kpb = jax.random.split(key, 8)

    Vx = jax.random.normal(kvx, (B, C, H, W), dtype=jnp.float32)
    Tx = jax.random.normal(ktx, (B, C, T), dtype=jnp.float32)

    params = {
        # Conv2d(C, C, 1) / Conv1d(C, 2C, 1) / Conv2d(C, C, 1) parameters.
        "q_w": jax.random.normal(kq, (C, C, 1, 1), jnp.float32) / jnp.sqrt(C),
        "q_b": jax.random.normal(kqb, (C,), jnp.float32) * 0.1,
        "kv_w": jax.random.normal(kkv, (2 * C, C, 1), jnp.float32) / jnp.sqrt(C),
        "kv_b": jax.random.normal(kkvb, (2 * C,), jnp.float32) * 0.1,
        "proj_w": jax.random.normal(kp, (C, C, 1, 1), jnp.float32) / jnp.sqrt(C),
        "proj_b": jax.random.normal(kpb, (C,), jnp.float32) * 0.1,
    }

    out = cgi_mh(Vx, Tx, params, NUM_HEADS)
    out = jax.block_until_ready(out)

    ref = _reference(Vx, Tx, params, NUM_HEADS)
    ref = jax.block_until_ready(ref)

    assert out.shape == (B, C, H, W), out.shape
    max_err = float(jnp.max(jnp.abs(out - ref)))
    assert jnp.allclose(out, ref, rtol=2e-3, atol=2e-3), max_err

    print("KERNEL_OK")
</pallas_src>

<mosaic_0001>
module attributes {stable_mosaic.version = 11 : i64} {
  func.func @_cgi_mh_kernel(%arg0: i32, %arg1: i32, %arg2: memref<1x32x64xf32, #tpu.memory_space<vmem>>, %arg3: memref<1x32x8xf32, #tpu.memory_space<vmem>>, %arg4: memref<32x32xf32, #tpu.memory_space<vmem>>, %arg5: memref<32x1xf32, #tpu.memory_space<vmem>>, %arg6: memref<32x32xf32, #tpu.memory_space<vmem>>, %arg7: memref<32x1xf32, #tpu.memory_space<vmem>>, %arg8: memref<32x32xf32, #tpu.memory_space<vmem>>, %arg9: memref<32x1xf32, #tpu.memory_space<vmem>>, %arg10: memref<32x32xf32, #tpu.memory_space<vmem>>, %arg11: memref<32x1xf32, #tpu.memory_space<vmem>>, %arg12: memref<1x32x64xf32, #tpu.memory_space<vmem>>) attributes {dimension_semantics = [#tpu.dimension_semantics<parallel>, #tpu.dimension_semantics<parallel>], iteration_bounds = array<i64: 2, 1>, scalar_prefetch = 0 : i64, scratch_operands = 0 : i64, tpu.core_type = #tpu.core_type<tc>, window_params = [{transform_indices = @transform_0, window_bounds = array<i64: 1, 32, 64>}, {transform_indices = @transform_1, window_bounds = array<i64: 1, 32, 8>}, {pipeline_mode = #tpu.pipeline_mode<synchronous>, transform_indices = @transform_2, window_bounds = array<i64: 32, 32>}, {pipeline_mode = #tpu.pipeline_mode<synchronous>, transform_indices = @transform_3, window_bounds = array<i64: 32, 1>}, {pipeline_mode = #tpu.pipeline_mode<synchronous>, transform_indices = @transform_4, window_bounds = array<i64: 32, 32>}, {pipeline_mode = #tpu.pipeline_mode<synchronous>, transform_indices = @transform_5, window_bounds = array<i64: 32, 1>}, {pipeline_mode = #tpu.pipeline_mode<synchronous>, transform_indices = @transform_6, window_bounds = array<i64: 32, 32>}, {pipeline_mode = #tpu.pipeline_mode<synchronous>, transform_indices = @transform_7, window_bounds = array<i64: 32, 1>}, {pipeline_mode = #tpu.pipeline_mode<synchronous>, transform_indices = @transform_8, window_bounds = array<i64: 32, 32>}, {pipeline_mode = #tpu.pipeline_mode<synchronous>, transform_indices = @transform_9, window_bounds = array<i64: 32, 1>}, {transform_indices = @transform_10, window_bounds = array<i64: 1, 32, 64>}]} {
    %c0 = arith.constant 0 : index
    %c0_0 = arith.constant 0 : index
    %c0_1 = arith.constant 0 : index
    %0 = vector.load %arg2[%c0, %c0_0, %c0_1] : memref<1x32x64xf32, #tpu.memory_space<vmem>>, vector<1x32x64xf32>
    %1 = vector.shape_cast %0 : vector<1x32x64xf32> to vector<32x64xf32>
    %c0_2 = arith.constant 0 : index
    %c0_3 = arith.constant 0 : index
    %c0_4 = arith.constant 0 : index
    %2 = vector.load %arg3[%c0_2, %c0_3, %c0_4] : memref<1x32x8xf32, #tpu.memory_space<vmem>>, vector<1x32x8xf32>
    %3 = vector.shape_cast %2 : vector<1x32x8xf32> to vector<32x8xf32>
    %c0_5 = arith.constant 0 : index
    %c0_6 = arith.constant 0 : index
    %4 = vector.load %arg4[%c0_5, %c0_6] : memref<32x32xf32, #tpu.memory_space<vmem>>, vector<32x32xf32>
    %cst = arith.constant dense<0.000000e+00> : vector<32x64xf32>
    %5 = tpu.matmul %4, %1, %cst {dimension_numbers = #tpu.dot_dimension_numbers<[1], [0], [0], [1], [0, 0, 1, 1], [], []>} : vector<32x32xf32>, vector<32x64xf32>, vector<32x64xf32> -> vector<32x64xf32>
    %c0_7 = arith.constant 0 : index
    %c0_8 = arith.constant 0 : index
    %6 = vector.load %arg5[%c0_7, %c0_8] : memref<32x1xf32, #tpu.memory_space<vmem>>, vector<32x1xf32>
    %7 = vector.broadcast %6 : vector<32x1xf32> to vector<32x64xf32>
    %8 = arith.addf %5, %7 : vector<32x64xf32>
    %c0_9 = arith.constant 0 : index
    %c0_10 = arith.constant 0 : index
    %9 = vector.load %arg6[%c0_9, %c0_10] : memref<32x32xf32, #tpu.memory_space<vmem>>, vector<32x32xf32>
    %cst_11 = arith.constant dense<0.000000e+00> : vector<32x8xf32>
    %10 = tpu.matmul %9, %3, %cst_11 {dimension_numbers = #tpu.dot_dimension_numbers<[1], [0], [0], [1], [0, 0, 1, 1], [], []>} : vector<32x32xf32>, vector<32x8xf32>, vector<32x8xf32> -> vector<32x8xf32>
    %c0_12 = arith.constant 0 : index
    %c0_13 = arith.constant 0 : index
    %11 = vector.load %arg7[%c0_12, %c0_13] : memref<32x1xf32, #tpu.memory_space<vmem>>, vector<32x1xf32>
    %12 = vector.broadcast %11 : vector<32x1xf32> to vector<32x8xf32>
    %13 = arith.addf %10, %12 : vector<32x8xf32>
    %c0_14 = arith.constant 0 : index
    %c0_15 = arith.constant 0 : index
    %14 = vector.load %arg8[%c0_14, %c0_15] : memref<32x32xf32, #tpu.memory_space<vmem>>, vector<32x32xf32>
    %cst_16 = arith.constant dense<0.000000e+00> : vector<32x8xf32>
    %15 = tpu.matmul %14, %3, %cst_16 {dimension_numbers = #tpu.dot_dimension_numbers<[1], [0], [0], [1], [0, 0, 1, 1], [], []>} : vector<32x32xf32>, vector<32x8xf32>, vector<32x8xf32> -> vector<32x8xf32>
    %c0_17 = arith.constant 0 : index
    %c0_18 = arith.constant 0 : index
    %16 = vector.load %arg9[%c0_17, %c0_18] : memref<32x1xf32, #tpu.memory_space<vmem>>, vector<32x1xf32>
    %17 = vector.broadcast %16 : vector<32x1xf32> to vector<32x8xf32>
    %18 = arith.addf %15, %17 : vector<32x8xf32>
    %19 = vector.extract_strided_slice %8 {offsets = [0, 0], sizes = [8, 64], strides = [1, 1]} : vector<32x64xf32> to vector<8x64xf32>
    %20 = vector.extract_strided_slice %13 {offsets = [0, 0], sizes = [8, 8], strides = [1, 1]} : vector<32x8xf32> to vector<8x8xf32>
    %21 = vector.extract_strided_slice %18 {offsets = [0, 0], sizes = [8, 8], strides = [1, 1]} : vector<32x8xf32> to vector<8x8xf32>
    %cst_19 = arith.constant dense<0.000000e+00> : vector<8x64xf32>
    %22 = tpu.matmul %20, %19, %cst_19 {dimension_numbers = #tpu.dot_dimension_numbers<[0], [0], [1], [1], [0, 1, 1, 1], [], []>} : vector<8x8xf32>, vector<8x64xf32>, vector<8x64xf32> -> vector<8x64xf32>
    %cst_20 = arith.constant 0.353553385 : f32
    %23 = vector.broadcast %cst_20 : f32 to vector<8x64xf32>
    %24 = arith.mulf %22, %23 : vector<8x64xf32>
    %cst_21 = arith.constant dense<0xFF800000> : vector<64xf32>
    %25 = vector.multi_reduction <maximumf>, %24, %cst_21 [0] : vector<8x64xf32> to vector<64xf32>
    %26 = vector.shape_cast %25 : vector<64xf32> to vector<1x64xf32>
    %27 = vector.broadcast %26 : vector<1x64xf32> to vector<8x64xf32>
    %28 = arith.subf %24, %27 : vector<8x64xf32>
    %29 = math.exp %28 : vector<8x64xf32>
    %cst_22 = arith.constant dense<0.000000e+00> : vector<64xf32>
    %30 = vector.multi_reduction <add>, %29, %cst_22 [0] : vector<8x64xf32> to vector<64xf32>
    %31 = vector.shape_cast %30 : vector<64xf32> to vector<1x64xf32>
    %32 = vector.broadcast %31 : vector<1x64xf32> to vector<8x64xf32>
    %33 = arith.divf %29, %32 : vector<8x64xf32>
    %cst_23 = arith.constant dense<0.000000e+00> : vector<8x64xf32>
    %34 = tpu.matmul %21, %33, %cst_23 {dimension_numbers = #tpu.dot_dimension_numbers<[1], [0], [0], [1], [0, 0, 1, 1], [], []>} : vector<8x8xf32>, vector<8x64xf32>, vector<8x64xf32> -> vector<8x64xf32>
    %35 = vector.extract_strided_slice %8 {offsets = [8, 0], sizes = [8, 64], strides = [1, 1]} : vector<32x64xf32> to vector<8x64xf32>
    %36 = vector.extract_strided_slice %13 {offsets = [8, 0], sizes = [8, 8], strides = [1, 1]} : vector<32x8xf32> to vector<8x8xf32>
    %37 = vector.extract_strided_slice %18 {offsets = [8, 0], sizes = [8, 8], strides = [1, 1]} : vector<32x8xf32> to vector<8x8xf32>
    %cst_24 = arith.constant dense<0.000000e+00> : vector<8x64xf32>
    %38 = tpu.matmul %36, %35, %cst_24 {dimension_numbers = #tpu.dot_dimension_numbers<[0], [0], [1], [1], [0, 1, 1, 1], [], []>} : vector<8x8xf32>, vector<8x64xf32>, vector<8x64xf32> -> vector<8x64xf32>
    %cst_25 = arith.constant 0.353553385 : f32
    %39 = vector.broadcast %cst_25 : f32 to vector<8x64xf32>
    %40 = arith.mulf %38, %39 : vector<8x64xf32>
    %cst_26 = arith.constant dense<0xFF800000> : vector<64xf32>
    %41 = vector.multi_reduction <maximumf>, %40, %cst_26 [0] : vector<8x64xf32> to vector<64xf32>
    %42 = vector.shape_cast %41 : vector<64xf32> to vector<1x64xf32>
    %43 = vector.broadcast %42 : vector<1x64xf32> to vector<8x64xf32>
    %44 = arith.subf %40, %43 : vector<8x64xf32>
    %45 = math.exp %44 : vector<8x64xf32>
    %cst_27 = arith.constant dense<0.000000e+00> : vector<64xf32>
    %46 = vector.multi_reduction <add>, %45, %cst_27 [0] : vector<8x64xf32> to vector<64xf32>
    %47 = vector.shape_cast %46 : vector<64xf32> to vector<1x64xf32>
    %48 = vector.broadcast %47 : vector<1x64xf32> to vector<8x64xf32>
    %49 = arith.divf %45, %48 : vector<8x64xf32>
    %cst_28 = arith.constant dense<0.000000e+00> : vector<8x64xf32>
    %50 = tpu.matmul %37, %49, %cst_28 {dimension_numbers = #tpu.dot_dimension_numbers<[1], [0], [0], [1], [0, 0, 1, 1], [], []>} : vector<8x8xf32>, vector<8x64xf32>, vector<8x64xf32> -> vector<8x64xf32>
    %51 = vector.extract_strided_slice %8 {offsets = [16, 0], sizes = [8, 64], strides = [1, 1]} : vector<32x64xf32> to vector<8x64xf32>
    %52 = vector.extract_strided_slice %13 {offsets = [16, 0], sizes = [8, 8], strides = [1, 1]} : vector<32x8xf32> to vector<8x8xf32>
    %53 = vector.extract_strided_slice %18 {offsets = [16, 0], sizes = [8, 8], strides = [1, 1]} : vector<32x8xf32> to vector<8x8xf32>
    %cst_29 = arith.constant dense<0.000000e+00> : vector<8x64xf32>
    %54 = tpu.matmul %52, %51, %cst_29 {dimension_numbers = #tpu.dot_dimension_numbers<[0], [0], [1], [1], [0, 1, 1, 1], [], []>} : vector<8x8xf32>, vector<8x64xf32>, vector<8x64xf32> -> vector<8x64xf32>
    %cst_30 = arith.constant 0.353553385 : f32
    %55 = vector.broadcast %cst_30 : f32 to vector<8x64xf32>
    %56 = arith.mulf %54, %55 : vector<8x64xf32>
    %cst_31 = arith.constant dense<0xFF800000> : vector<64xf32>
    %57 = vector.multi_reduction <maximumf>, %56, %cst_31 [0] : vector<8x64xf32> to vector<64xf32>
    %58 = vector.shape_cast %57 : vector<64xf32> to vector<1x64xf32>
    %59 = vector.broadcast %58 : vector<1x64xf32> to vector<8x64xf32>
    %60 = arith.subf %56, %59 : vector<8x64xf32>
    %61 = math.exp %60 : vector<8x64xf32>
    %cst_32 = arith.constant dense<0.000000e+00> : vector<64xf32>
    %62 = vector.multi_reduction <add>, %61, %cst_32 [0] : vector<8x64xf32> to vector<64xf32>
    %63 = vector.shape_cast %62 : vector<64xf32> to vector<1x64xf32>
    %64 = vector.broadcast %63 : vector<1x64xf32> to vector<8x64xf32>
    %65 = arith.divf %61, %64 : vector<8x64xf32>
    %cst_33 = arith.constant dense<0.000000e+00> : vector<8x64xf32>
    %66 = tpu.matmul %53, %65, %cst_33 {dimension_numbers = #tpu.dot_dimension_numbers<[1], [0], [0], [1], [0, 0, 1, 1], [], []>} : vector<8x8xf32>, vector<8x64xf32>, vector<8x64xf32> -> vector<8x64xf32>
    %67 = vector.extract_strided_slice %8 {offsets = [24, 0], sizes = [8, 64], strides = [1, 1]} : vector<32x64xf32> to vector<8x64xf32>
    %68 = vector.extract_strided_slice %13 {offsets = [24, 0], sizes = [8, 8], strides = [1, 1]} : vector<32x8xf32> to vector<8x8xf32>
    %69 = vector.extract_strided_slice %18 {offsets = [24, 0], sizes = [8, 8], strides = [1, 1]} : vector<32x8xf32> to vector<8x8xf32>
    %cst_34 = arith.constant dense<0.000000e+00> : vector<8x64xf32>
    %70 = tpu.matmul %68, %67, %cst_34 {dimension_numbers = #tpu.dot_dimension_numbers<[0], [0], [1], [1], [0, 1, 1, 1], [], []>} : vector<8x8xf32>, vector<8x64xf32>, vector<8x64xf32> -> vector<8x64xf32>
    %cst_35 = arith.constant 0.353553385 : f32
    %71 = vector.broadcast %cst_35 : f32 to vector<8x64xf32>
    %72 = arith.mulf %70, %71 : vector<8x64xf32>
    %cst_36 = arith.constant dense<0xFF800000> : vector<64xf32>
    %73 = vector.multi_reduction <maximumf>, %72, %cst_36 [0] : vector<8x64xf32> to vector<64xf32>
    %74 = vector.shape_cast %73 : vector<64xf32> to vector<1x64xf32>
    %75 = vector.broadcast %74 : vector<1x64xf32> to vector<8x64xf32>
    %76 = arith.subf %72, %75 : vector<8x64xf32>
    %77 = math.exp %76 : vector<8x64xf32>
    %cst_37 = arith.constant dense<0.000000e+00> : vector<64xf32>
    %78 = vector.multi_reduction <add>, %77, %cst_37 [0] : vector<8x64xf32> to vector<64xf32>
    %79 = vector.shape_cast %78 : vector<64xf32> to vector<1x64xf32>
    %80 = vector.broadcast %79 : vector<1x64xf32> to vector<8x64xf32>
    %81 = arith.divf %77, %80 : vector<8x64xf32>
    %cst_38 = arith.constant dense<0.000000e+00> : vector<8x64xf32>
    %82 = tpu.matmul %69, %81, %cst_38 {dimension_numbers = #tpu.dot_dimension_numbers<[1], [0], [0], [1], [0, 0, 1, 1], [], []>} : vector<8x8xf32>, vector<8x64xf32>, vector<8x64xf32> -> vector<8x64xf32>
    %83 = tpu.concatenate %34, %50, %66, %82 in 0 : vector<8x64xf32>, vector<8x64xf32>, vector<8x64xf32>, vector<8x64xf32> -> vector<32x64xf32>
    %c0_39 = arith.constant 0 : index
    %c0_40 = arith.constant 0 : index
    %84 = vector.load %arg10[%c0_39, %c0_40] : memref<32x32xf32, #tpu.memory_space<vmem>>, vector<32x32xf32>
    %cst_41 = arith.constant dense<0.000000e+00> : vector<32x64xf32>
    %85 = tpu.matmul %84, %83, %cst_41 {dimension_numbers = #tpu.dot_dimension_numbers<[1], [0], [0], [1], [0, 0, 1, 1], [], []>} : vector<32x32xf32>, vector<32x64xf32>, vector<32x64xf32> -> vector<32x64xf32>
    %c0_42 = arith.constant 0 : index
    %c0_43 = arith.constant 0 : index
    %86 = vector.load %arg11[%c0_42, %c0_43] : memref<32x1xf32, #tpu.memory_space<vmem>>, vector<32x1xf32>
    %87 = vector.broadcast %86 : vector<32x1xf32> to vector<32x64xf32>
    %88 = arith.addf %85, %87 : vector<32x64xf32>
    %c0_44 = arith.constant 0 : index
    %c0_45 = arith.constant 0 : index
    %c0_46 = arith.constant 0 : index
    %89 = vector.load %arg12[%c0_44, %c0_45, %c0_46] : memref<1x32x64xf32, #tpu.memory_space<vmem>>, vector<1x32x64xf32>
    %90 = vector.shape_cast %89 : vector<1x32x64xf32> to vector<32x64xf32>
    %91 = vector.shape_cast %88 : vector<32x64xf32> to vector<1x32x64xf32>
    tpu.vector_store %arg12[%c0_44, %c0_45, %c0_46], %91 {strides = array<i32>} : memref<1x32x64xf32, #tpu.memory_space<vmem>>, vector<1x32x64xf32>,
    return
  }
  func.func @transform_0(%arg0: i32, %arg1: i32) -> (i32, i32, i32) {
    %c0_i32 = arith.constant 0 : i32
    %c0_i32_0 = arith.constant 0 : i32
    return %arg0, %c0_i32, %arg1 : i32, i32, i32
  }
  func.func @transform_1(%arg0: i32, %arg1: i32) -> (i32, i32, i32) {
    %c0_i32 = arith.constant 0 : i32
    %c0_i32_0 = arith.constant 0 : i32
    %c0_i32_1 = arith.constant 0 : i32
    return %arg0, %c0_i32, %c0_i32_0 : i32, i32, i32
  }
  func.func @transform_2(%arg0: i32, %arg1: i32) -> (i32, i32) {
    %c0_i32 = arith.constant 0 : i32
    %c0_i32_0 = arith.constant 0 : i32
    %c0_i32_1 = arith.constant 0 : i32
    return %c0_i32, %c0_i32_0 : i32, i32
  }
  func.func @transform_3(%arg0: i32, %arg1: i32) -> (i32, i32) {
    %c0_i32 = arith.constant 0 : i32
    %c0_i32_0 = arith.constant 0 : i32
    %c0_i32_1 = arith.constant 0 : i32
    return %c0_i32, %c0_i32_0 : i32, i32
  }
  func.func @transform_4(%arg0: i32, %arg1: i32) -> (i32, i32) {
    %c0_i32 = arith.constant 0 : i32
    %c0_i32_0 = arith.constant 0 : i32
    %c0_i32_1 = arith.constant 0 : i32
    return %c0_i32, %c0_i32_0 : i32, i32
  }
  func.func @transform_5(%arg0: i32, %arg1: i32) -> (i32, i32) {
    %c0_i32 = arith.constant 0 : i32
    %c0_i32_0 = arith.constant 0 : i32
    %c0_i32_1 = arith.constant 0 : i32
    return %c0_i32, %c0_i32_0 : i32, i32
  }
  func.func @transform_6(%arg0: i32, %arg1: i32) -> (i32, i32) {
    %c0_i32 = arith.constant 0 : i32
    %c0_i32_0 = arith.constant 0 : i32
    %c0_i32_1 = arith.constant 0 : i32
    return %c0_i32, %c0_i32_0 : i32, i32
  }
  func.func @transform_7(%arg0: i32, %arg1: i32) -> (i32, i32) {
    %c0_i32 = arith.constant 0 : i32
    %c0_i32_0 = arith.constant 0 : i32
    %c0_i32_1 = arith.constant 0 : i32
    return %c0_i32, %c0_i32_0 : i32, i32
  }
  func.func @transform_8(%arg0: i32, %arg1: i32) -> (i32, i32) {
    %c0_i32 = arith.constant 0 : i32
    %c0_i32_0 = arith.constant 0 : i32
    %c0_i32_1 = arith.constant 0 : i32
    return %c0_i32, %c0_i32_0 : i32, i32
  }
  func.func @transform_9(%arg0: i32, %arg1: i32) -> (i32, i32) {
    %c0_i32 = arith.constant 0 : i32
    %c0_i32_0 = arith.constant 0 : i32
    %c0_i32_1 = arith.constant 0 : i32
    return %c0_i32, %c0_i32_0 : i32, i32
  }
  func.func @transform_10(%arg0: i32, %arg1: i32) -> (i32, i32, i32) {
    %c0_i32 = arith.constant 0 : i32
    %c0_i32_0 = arith.constant 0 : i32
    return %arg0, %c0_i32, %arg1 : i32, i32, i32
  }
}

</mosaic_0001>

<bundles_post_ra>
// kernel: tpu_custom_call.1
= control target key start
LH: loop header
LB: loop body
LE: loop exit
PB: predicated region body
PF: predicated region fallthrough
CT: control target
= control target key end

     0   :  { %15 = vsyncpa [#allocation3], 0  ;;  %s2538_s0 = inlined_call_operand.vmem [shape: f32[2,32,64], index: 0, kind: input, shape index: {}]   ;;  %s2539_s1 = inlined_call_operand.vmem [shape: f32[2,32,8], index: 1, kind: input, shape index: {}]   ;;  %s2540_s2 = inlined_call_operand.vmem [shape: f32[32,32], index: 2, kind: input, shape index: {}]   ;;  %s2541_s3 = inlined_call_operand.vmem [shape: f32[32,1], index: 3, kind: input, shape index: {}]   ;;  %s2542_s4 = inlined_call_operand.vmem [shape: f32[32,32], index: 4, kind: input, shape index: {}]   ;;  %s2543_s5 = inlined_call_operand.vmem [shape: f32[32,1], index: 5, kind: input, shape index: {}]   ;;  %s2544_s6 = inlined_call_operand.vmem [shape: f32[32,32], index: 6, kind: input, shape index: {}]   ;;  %s2545_s7 = inlined_call_operand.vmem [shape: f32[32,1], index: 7, kind: input, shape index: {}]   ;;  %s2546_s8 = inlined_call_operand.vmem [shape: f32[32,32], index: 8, kind: input, shape index: {}]   ;;  %s2547_s9 = inlined_call_operand.vmem [shape: f32[32,1], index: 9, kind: input, shape index: {}]   ;;  %s2548_s10 = inlined_call_operand.hbm [shape: f32[2,32,64], index: 10, kind: output, shape index: {}]  }
   0x1   :  { %17 = vsyncpa [#allocation3 + $0x1], 0  ;;  %s2252_s13 = smov 0   ;;  %s2254_s14 = smov 0  }
   0x2   :  { %s2256_s15 = smov 0   ;;  %s2258_s16 = smov 0  }
   0x3   :  { %s2260_s17 = smov 0   ;;  %s2262_s18 = smov 0  }
   0x4 LB: > { %2552 = sst [smem:[#allocation5_spill]] %s2177_s15  ;;  %s1815_s19 = sadd.s32 4294967295, %s2189_s18   ;;  %s2189_s18 = sphi %s2262_s18, %s23_s18   ;;  %s2185_s17 = sphi %s2260_s17, %s2561_s17   ;;  %s2181_s16 = sphi %s2258_s16, %s2560_s16   ;;  %s2177_s15 = sphi %s2256_s15, %s2559_s15   ;;  %s2173_s14 = sphi %s2254_s14, %s2563_s14   ;;  %s2169_s13 = sphi %s2252_s13, %s2562_s13  }
   0x5   : > { %2553 = sst [smem:[#allocation6_spill]] %s2185_s17  ;;  %s1816_s20 = sadd.s32 4294967294, %s2189_s18  }
   0x6   : > { %s35_s21 = sadd.s32 1, %s2185_s17  ;;  %s266_s22 = sadd.s32 1, %s2177_s15 }
   0x7   : > { %p37_p0 = scmp.ge.s32.totalorder %s35_s21, 2  ;;  %p276_p1 = scmp.ne.s32.totalorder %s2177_s15, %s2173_s14 }
   0x8   : > { %p277_p2 = scmp.eq.s32.totalorder %s1815_s19, 1  ;;  %p282_p3 = scmp.ne.s32.totalorder %s2173_s14, %s2169_s13 }
   0x9   : > { %s2565_s21 = smov (%p37_p0, %s35_s21), 0  ;;  %p283_p5 = scmp.eq.s32.totalorder %s1816_s20, 1 }
   0xa   : > { %2554 = sst [smem:[#allocation7_spill]] %s2565_s21  ;;  %p2292_p4 = por %p277_p2, %p276_p1 }
   0xb   : > { %s261_s24 = ssub.s32 %s2185_s17, %s2565_s21  ;;  %p1819_p6 = scmp.ge.s32.totalorder %s2189_s18, 1 }
   0xc   : > { %p264_p7 = scmp.eq.s32.totalorder %s261_s24, 0  ;;  %p2299_p8 = por %p283_p5, %p282_p3 }
   0xd   : > { %p344_p9 = scmp.lt.s32.totalorder %s2189_s18, 3 }
   0xe   : > { %s2305_s26 = scalar_select %p264_p7, %s2177_s15, %s266_s22  }
   0xf   : > { %p345_p10 = pnand %p1819_p6, %p344_p9 }
  0x10   : > { %2557 = sst [smem:[#allocation8_spill]] %s2305_s26  ;;  %p390_p11 = scmp.lt.s32.totalorder (!%p345_p10), %s2181_s16, 1  ;;  %v411_v0 = vld [vmem:[%s2540_s2] sm:$0xff] (!%p345_p10)  ;;  %vm439_vm0 = vcmask (!%p345_p10), 261120   ;;  %v2191_v1 = vmov (!%p345_p10), 0   ;;  %v543_v2 = vld [vmem:[%s2543_s5 + $0x10] sm:$0xff] (!%p345_p10) }
  0x11   : > { %348 = sbr.rel (%p345_p10) target bundleno = 1124 (0x464), region = 60  ;;  %1913 = vmatprep.mubr.msk.f32.mxu1 (!%p345_p10), %vm439_vm0, %v411_v0  ;;  %2094 = vset.pattern.permute.xlu1 (!%p345_p10), %v2191_v1  ;;  %v541_v3 = vld [vmem:[%s2543_s5] sm:$0xff] (!%p345_p10)  ;;  %v544_v4 = vld [vmem:[%s2543_s5 + $0x18] sm:$0xff] (!%p345_p10)  ;;  %v542_v5 = vld [vmem:[%s2543_s5 + $0x8] sm:$0xff] (!%p345_p10)  ;;  %v2192_v33 = vmov (!%p345_p10), 0.0   ;;  %vm2193_vm1 = vmmov (!%p345_p10), 0  }
  0x12   : > { %2093 = vset.pattern.permute.xlu0 (!%p345_p10), %v2191_v1  ;;  %557 = vperm.xlu1 (!%p345_p10), %2094, %v543_v2   ;;  %v662_v6 = vld [vmem:[%s2544_s6] sm:$0xff] (!%p345_p10)  ;;  %v416_v18 = vld [vmem:[%s2541_s3 + $0x8] sm:$0xff] (!%p345_p10)  ;;  %v418_v21 = vld [vmem:[%s2541_s3 + $0x18] sm:$0xff] (!%p345_p10)  ;;  %vm819_vm2 = vcmask (!%p345_p10), 64512   ;;  %vm894_vm3 = vcmask (!%p345_p10), 523264   ;;  %s1856_s15 = sshll.u32 (!%p345_p10), %s2181_s16, 9 }
  0x13   : > { %547 = vperm.xlu0 (!%p345_p10), %2093, %v541_v3   ;;  %1941 = vmatprep.mubr.msk.f32.mxu0 (!%p345_p10), %vm439_vm0, %v662_v6  ;;  %v415_v19 = vld [vmem:[%s2541_s3] sm:$0xff] (!%p345_p10)  ;;  %v417_v22 = vld [vmem:[%s2541_s3 + $0x10] sm:$0xff] (!%p345_p10)  ;;  %v412_v23 = vld [vmem:[%s2540_s2 + $0x8] sm:$0xff] (!%p345_p10) }
  0x14   : > { %v413_v24 = vld [vmem:[%s2540_s2 + $0x10] sm:$0xff] (!%p345_p10)  ;;  %v663_v25 = vld [vmem:[%s2544_s6 + $0x8] sm:$0xff] (!%p345_p10)  ;;  %v414_v27 = vld [vmem:[%s2540_s2 + $0x18] sm:$0xff] (!%p345_p10) }
  0x15   : > { %v664_v26 = vld [vmem:[%s2544_s6 + $0x10] sm:$0xff] (!%p345_p10)  ;;  %v537_v28 = vld [vmem:[%s2542_s4] sm:$0xff] (!%p345_p10)  ;;  %v665_v29 = vld [vmem:[%s2544_s6 + $0x18] sm:$0xff] (!%p345_p10) }
  0x16   : > { %562 = vperm.xlu1 (!%p345_p10), %2094, %v544_v4   ;;  %v538_v30 = vld [vmem:[%s2542_s4 + $0x8] sm:$0xff] (!%p345_p10)  ;;  %v539_v31 = vld [vmem:[%s2542_s4 + $0x10] sm:$0xff] (!%p345_p10)  ;;  %v540_v32 = vld [vmem:[%s2542_s4 + $0x18] sm:$0xff] (!%p345_p10) }
  0x17   : > { %552 = vperm.xlu0 (!%p345_p10), %2093, %v542_v5   ;;  %v667_v55 = vld [vmem:[%s2545_s7 + $0x8] sm:$0xff] (!%p345_p10)  ;;  %v668_v57 = vld [vmem:[%s2545_s7 + $0x10] sm:$0xff] (!%p345_p10)  ;;  %v669_v60 = vld [vmem:[%s2545_s7 + $0x18] sm:$0xff] (!%p345_p10) }
  0x18   : > { %s391_s29 = scalar_select %p390_p11, %s2181_s16, 1  ;;  %v1586_v61 = vld [vmem:[%s2547_s9 + $0x8] sm:$0xff]  ;;  %v1588_v62 = vld [vmem:[%s2547_s9 + $0x18] sm:$0xff]  ;;  %v666_v63 = vld [vmem:[%s2545_s7] sm:$0xff] }
  0x19   : > { %v1585_v0 = vld [vmem:[%s2547_s9] sm:$0xff]  ;;  %v1587_v1 = vld [vmem:[%s2547_s9 + $0x10] sm:$0xff] }
  0x1a   : > { %s1854_s20 = sshll.u32 %s391_s29, 5  ;;  %426 = vperm.xlu1 %2094, %v416_v18   ;;  %s2488_s29 = scalar_lea.hbm %s2548_s10, %s1856_s15 }
  0x1b   : > { %s397_s21 = scalar_lea.vmem %s2538_s0, %s1854_s20  ;;  %s402_s30 = scalar_lea.vmem %s2539_s1, %s1854_s20  ;;  %421 = vperm.xlu0 %2093, %v415_v19  }
  0x1c   : > { %v403_v7 = vld [vmem:[%s397_s21] sm:$0xff]  ;;  %v404_v8 = vld [vmem:[%s397_s21 + $0x8] sm:$0xff]  ;;  %v405_v9 = vld [vmem:[%s397_s21 + $0x10] sm:$0xff]  ;;  %s2194_s20 = smov [#allocation2]  }
  0x1d   : > { %v2001_v10 = vpack.c.bf16 %v404_v8, %v403_v7  ;;  %v406_v11 = vld [vmem:[%s397_s21 + $0x18] sm:$0xff]  ;;  %v407_v12 = vld [vmem:[%s402_s30] sm:$0xff]  ;;  %v408_v13 = vld [vmem:[%s402_s30 + $0x8] sm:$0xff]  ;;  %s2115_s22 = sshll.u32 %s2194_s20, 4  ;;  %s2116_s22 = int_to_ptr.vmem [resolvable:$false] %s2115_s22 }
  0x1e   : > { %v2005_v14 = vpack.c.bf16 %v406_v11, %v405_v9  ;;  %v2009_v15 = vpack.c.bf16 %v408_v13, %v407_v12  ;;  %v409_v16 = vld [vmem:[%s402_s30 + $0x10] sm:$0xff]  ;;  %v410_v17 = vld [vmem:[%s402_s30 + $0x18] sm:$0xff]  ;;  %436 = vperm.xlu1 %2094, %v418_v21   ;;  %s387_s30 = sand.u32 1, %s2173_s14   ;;  %s2117_s24 = scalar_lea.vmem %s2116_s22, 1024 }
  0x1f   : > { %2002 = vmatprep.subr.bf16.mxu1 %v2001_v10  ;;  %v2013_v20 = vpack.c.bf16 %v410_v17, %v409_v16  ;;  %431 = vperm.xlu0 %2093, %v417_v22   ;;  %s1820_s11 = sshll.u32 %s387_s30, 5  ;;  %s2492_s16 = scalar_lea.sflag [#allocation3], %s387_s30 }
  0x20   : > { %2004 = vmatpush3.bf16.msra.mxu1 %v2001_v10  ;;  %2018 = vmatprep.subr.bf16.mxu0 %v2009_v15  ;;  %s389_s12 = scalar_lea.vmem [#allocation2], %s1820_s11 }
  0x21   : > { %2006 = vmatprep.subr.bf16.mxu1 %v2005_v14  ;;  %2020 = vmatpush3.bf16.msra.mxu0 %v2009_v15  ;;  %s1725_s19 = sshll.u32 %s389_s12, 4  ;;  %s2483_s19 = int_to_ptr.vmem [resolvable:$true] %s1725_s19 }
  0x22   : > { %2022 = vmatprep.subr.bf16.mxu0 %v2013_v20  ;;  %s2111_s21 = scalar_lea.vmem %s2483_s19, 512  ;;  %p2118_p1 = scmp.lt.s32.totalorder %s2483_s19, %s2116_s22 }
  0x23   : > { %p2112_p12 = scmp.ne.s32.totalorder %s2483_s19, %s2111_s21  ;;  %p2119_p2 = scmp.lt.s32.totalorder %s2117_s24, %s2111_s21 }
  0x24   : > { %2008 = vmatpush3.bf16.msra.mxu1 %v2005_v14 }
  0x25   : > { %2010 = vmatprep.subr.bf16.mxu1 %v2009_v15  ;;  %2024 = vmatpush3.bf16.msra.mxu0 %v2013_v20  ;;  %p2113_p13 = pnand %p2112_p12, %p2292_p4  ;;  %p2120_p3 = por %p2119_p2, %p2118_p1 }
  0x26   : > { %1957 = vmatprep.subr.mxu0 %v2192_v33 }
  0x27   : > { %1914 = vmatmul.mubr.msk.f32.vlgmr.msra.gmra.mrb[0].mxu1 %vm439_vm0, %v412_v23  ;;  %p2114_p0 = pneg %p2113_p13 }
  0x28   : > { %2012 = vmatpush3.bf16.msra.mxu1 %v2009_v15  ;;  %1916 = vmatprep.mubr.msk.f32.mxu1 %vm439_vm0, %v413_v24 }
  0x29   : > { %2014 = vmatprep.subr.bf16.mxu1 %v2013_v20  ;;  %1942 = vmatmul.mubr.msk.f32.vlgmr.msra.gmra.mrb[0].mxu0 %vm439_vm0, %v663_v25  ;;  %p2121_p5 = pnand %p2120_p3, %p2114_p0 }
  0x2a   : > { %1944 = vmatprep.mubr.msk.f32.mxu0 %vm439_vm0, %v664_v26 }
  0x2b   : > { %1917 = vmatmul.mubr.msk.f32.gmra.mrb[2].mxu1 %vm439_vm0, %v414_v27 }
  0x2c   : > { %2016 = vmatpush3.bf16.msra.mxu1 %v2013_v20  ;;  %1927 = vmatprep.mubr.msk.f32.mxu1 %vm439_vm0, %v537_v28 }
  0x2d   : > { %1945 = vmatmul.mubr.msk.f32.gmra.mrb[2].mxu0 %vm439_vm0, %v665_v29  ;;  %1947 = vmatprep.subr.mxu1 %v2192_v33 }
  0x2e   : > { %1959 = vmatprep.mubr.msk.f32.mxu0 %vm2193_vm1, %v2192_v33 }
  0x2f   : > { %1928 = vmatmul.mubr.msk.f32.vlgmr.msra.gmra.mrb[4].mxu1 %vm439_vm0, %v538_v30 }
  0x30   : > { %1930 = vmatprep.mubr.msk.f32.mxu1 %vm439_vm0, %v539_v31 }
  0x33   : > { %1931 = vmatmul.mubr.msk.f32.gmra.mrb[6].mxu1 %vm439_vm0, %v540_v32 }
  0x34   : > { %1949 = vmatprep.mubr.msk.f32.mxu1 %vm2193_vm1, %v2192_v33 }
  0x91   : > { %v558_v34 = vpop.permute.xlu1 %557 }
  0x92   : > { %v548_v35 = vpop.permute.xlu0 %547 }
  0x95   : > { %v563_v36 = vpop.permute.xlu1 %562 }
  0x96   : > { %v553_v37 = vpop.permute.xlu0 %552 }
  0x99   : > { %v427_v38 = vpop.permute.xlu1 %426 }
  0x9a   : > { %v422_v39 = vpop.permute.xlu0 %421 }
  0x9d   : > { %v437_v2 = vpop.permute.xlu1 %436 }
  0x9e   : > { %v432_v3 = vpop.permute.xlu0 %431 }
  0xfa   : > { %v1915_v40 = vpop.f32.mrb[0].mxu1 }
  0xfb   : > { %v524_v41 = vadd.f32 %v1915_v40, %v427_v38  ;;  %v518_v42 = vpop.f32.mrb[1].mxu1 }
  0xfc   : > { %v519_v43 = vadd.f32 %v518_v42, %v422_v39  ;;  %v2395_v54 = vpop.f32.mrb[0].mxu0 }
  0xfd   : > { %1958 = vmatpush3.msra.mxu0 %v524_v41  ;;  %v2400_v56 = vpop.f32.mrb[1].mxu0 }
  0xfe   : > { %v1918_v44 = vpop.f32.mrb[2].mxu1  ;;  %1948 = vmatpush3.msra.mxu1 %v519_v43  ;;  %1967 = vmatprep.subr.mxu0 %v2192_v33 }
  0xff   : > { %v528_v45 = vpop.f32.mrb[3].mxu1  ;;  %1952 = vmatprep.subr.mxu1 %v2192_v33  ;;  %v534_v7 = vadd.f32 %v1918_v44, %v437_v2 }
 0x100   : > { %v2405_v58 = vpop.f32.mrb[2].mxu0  ;;  %v529_v4 = vadd.f32 %v528_v45, %v432_v3 }
 0x101   : > { %v2407_v59 = vpop.f32.mrb[3].mxu0 }
 0x102   : > { %v1929_v46 = vpop.f32.mrb[4].mxu1 }
 0x103   : > { %v649_v47 = vadd.f32 %v1929_v46, %v553_v37  ;;  %v643_v48 = vpop.f32.mrb[5].mxu1 }
 0x104   : > { %v644_v49 = vadd.f32 %v643_v48, %v548_v35 }
 0x105   : > { %987 = vxpose.xlu1.b32.start.end [1/1] (short) (narrow) %v649_v47, 8 }
 0x106   : > { %v1932_v50 = vpop.f32.mrb[6].mxu1  ;;  %787 = vxpose.xlu0.b32.start.end [1/1] (short) (narrow) %v644_v49, 8 }
 0x107   : > { %v653_v51 = vpop.f32.mrb[7].mxu1  ;;  %v659_v53 = vadd.f32 %v1932_v50, %v563_v36 }
 0x108   : > { %v654_v52 = vadd.f32 %v653_v51, %v558_v34 }
 0x10a   : > { %1185 = vxpose.xlu0.b32.start.end [1/1] (short) (narrow) %v654_v52, 8 }
 0x10e   : > { %1383 = vxpose.xlu0.b32.start.end [1/1] (short) (narrow) %v659_v53, 8 }
 0x123   : > { %677 = vperm.xlu1 %2094, %v667_v55  }
 0x127   : > { %682 = vperm.xlu1 %2094, %v668_v57  }
 0x12b   : > { %687 = vperm.xlu1 %2094, %v669_v60  }
 0x12f   : > { %1596 = vperm.xlu1 %2094, %v1586_v61  }
 0x133   : > { %1606 = vperm.xlu1 %2094, %v1588_v62  }
 0x137   : > { %672 = vperm.xlu0 %2093, %v666_v63  }
 0x13b   : > { %1591 = vperm.xlu0 %2093, %v1585_v0  }
 0x13f   : > { %1601 = vperm.xlu0 %2093, %v1587_v1  }
 0x185   : > { %v1003_v5 = vpop.trf.xlu1 }
 0x186   : > { %1960 = vmatmul.mubr.msk.f32.vlgmr.msra.gmra.mrb[4].mxu0 %vm819_vm2, %v1003_v5  ;;  %v803_v6 = vpop.trf.xlu0 }
 0x187   : > { %1968 = vmatpush3.msra.mxu0 %v529_v4  ;;  %1950 = vmatmul.mubr.msk.f32.vlgmr.msra.gmra.mrb[8].mxu1 %vm819_vm2, %v803_v6 }
 0x188   : > { %1969 = vmatprep.mubr.msk.f32.mxu0 %vm2193_vm1, %v2192_v33  ;;  %1977 = vmatprep.subr.mxu0 %v2192_v33 }
 0x189   : > { %1954 = vmatprep.mubr.msk.f32.mxu1 %vm2193_vm1, %v2192_v33 }
 0x18a   : > { %v1201_v8 = vpop.trf.xlu0 }
 0x18b   : > { %1970 = vmatmul.mubr.msk.f32.vlgmr.msra.gmra.mrb[6].mxu0 %vm819_vm2, %v1201_v8 }
 0x18c   : > { %1978 = vmatpush3.msra.mxu0 %v534_v7  ;;  %1979 = vmatprep.mubr.msk.f32.mxu0 %vm2193_vm1, %v2192_v33 }
 0x18e   : > { %v1399_v9 = vpop.trf.xlu0 }
 0x18f   : > { %1980 = vmatmul.mubr.msk.f32.vlgmr.msra.gmra.mrb[8].mxu0 %vm819_vm2, %v1399_v9 }
 0x259   : > { %v1088_v10 = vpop.f32.mrb[4].mxu0 }
 0x25a   : > { %v1092_v11 = vmul.f32 0.35355338, %v1088_v10  ;;  %v889_v12 = vpop.f32.mrb[8].mxu1  ;;  %v1961_v13 = vpop.f32.mrb[5].mxu0 }
 0x25b   : > { %v893_v14 = vmul.f32 0.35355338, %v889_v12  ;;  %v1951_v15 = vpop.f32.mrb[9].mxu1 }
 0x25c   : > { %v1093_v16 = vsel %vm894_vm3, %v1092_v11, -inf }
 0x25d   : > { %v1094_v17 = vrot.slane %v1093_v16, 4  ;;  %v895_v18 = vsel %vm894_vm3, %v893_v14, -inf }
 0x25e   : > { %v896_v19 = vrot.slane %v895_v18, 4  ;;  %v1286_v20 = vpop.f32.mrb[6].mxu0 }
 0x25f   : > { %v1095_v21 = vmax.f32 %v1093_v16, %v1094_v17  ;;  %v1290_v22 = vmul.f32 0.35355338, %v1286_v20  ;;  %v1971_v23 = vpop.f32.mrb[7].mxu0 }
 0x260   : > { %v897_v24 = vmax.f32 %v895_v18, %v896_v19 }
 0x261   : > { %v1096_v25 = vrot.slane %v1095_v21, 2  ;;  %v1291_v26 = vsel %vm894_vm3, %v1290_v22, -inf }
 0x262   : > { %v898_v27 = vrot.slane %v897_v24, 2  ;;  %v1292_v28 = vrot.slane %v1291_v26, 4  ;;  %v1484_v29 = vpop.f32.mrb[8].mxu0 }
 0x263   : > { %v1097_v30 = vmax.f32 %v1095_v21, %v1096_v25  ;;  %v1488_v31 = vmul.f32 0.35355338, %v1484_v29  ;;  %v1981_v32 = vpop.f32.mrb[9].mxu0 }
 0x264   : > { %v899_v34 = vmax.f32 %v897_v24, %v898_v27  ;;  %v1293_v35 = vmax.f32 %v1291_v26, %v1292_v28  ;;  %v678_v32 = vpop.permute.xlu1 %677 }
 0x265   : > { %v1098_v36 = vrot.slane %v1097_v30, 1  ;;  %v1489_v37 = vsel %vm894_vm3, %v1488_v31, -inf }
 0x266   : > { %v900_v38 = vrot.slane %v899_v34, 1  ;;  %v1294_v39 = vrot.slane %v1293_v35, 2  ;;  %v1490_v40 = vrot.slane %v1489_v37, 4 }
 0x267   : > { %v1099_v41 = vmax.f32 %v1097_v30, %v1098_v36 }
 0x268   : > { %v901_v42 = vmax.f32 %v899_v34, %v900_v38  ;;  %v1295_v43 = vmax.f32 %v1293_v35, %v1294_v39  ;;  %v1491_v44 = vmax.f32 %v1489_v37, %v1490_v40  ;;  %v673_v34 = vpop.permute.xlu0 %672  ;;  %v683_v40 = vpop.permute.xlu1 %682 }
 0x269   : > { %v1100_v45 = vsub.f32 %v1092_v11, %v1099_v41  ;;  %v769_v37 = vadd.f32 %v2400_v56, %v673_v34 }
 0x26a   : > { %v902_v46 = vsub.f32 %v893_v14, %v901_v42  ;;  %v1296_v47 = vrot.slane %v1295_v43, 1  ;;  %v1492_v48 = vrot.slane %v1491_v44, 2  ;;  %v774_v42 = vadd.f32 %v2395_v54, %v678_v32 }
 0x26b   : > { %v1101_v49 = vmul.f32 1.442695, %v1100_v45 }
 0x26c   : > { %v903_v50 = vmul.f32 1.442695, %v902_v46  ;;  %v1297_v51 = vmax.f32 %v1295_v43, %v1296_v47  ;;  %v1493_v52 = vmax.f32 %v1491_v44, %v1492_v48  ;;  %v779_v44 = vadd.f32 %v2407_v59, %v683_v40  ;;  %v688_v45 = vpop.permute.xlu1 %687  ;;  %v1581_v46 = vld [vmem:[%s2546_s8] sm:$0xff] }
 0x26d   : > { %2095 = vpow2.f32 %v1101_v49  ;;  %v784_v54 = vadd.f32 %v2405_v58, %v688_v45  ;;  %1995 = vmatprep.mubr.msk.f32.mxu0 %vm439_vm0, %v1581_v46 }
 0x26e   : > { %2097 = vpow2.f32 %v903_v50  ;;  %v1298_v53 = vsub.f32 %v1290_v22, %v1297_v51  ;;  %v1494_v55 = vrot.slane %v1493_v52, 1 }
 0x270   : > { %v1299_v57 = vmul.f32 1.442695, %v1298_v53  ;;  %v1495_v60 = vmax.f32 %v1493_v52, %v1494_v55  ;;  %v1582_v55 = vld [vmem:[%s2546_s8 + $0x8] sm:$0xff] }
 0x272   : > { %2099 = vpow2.f32 %v1299_v57  ;;  %v1496_v61 = vsub.f32 %v1488_v31, %v1495_v60  ;;  %v1583_v57 = vld [vmem:[%s2546_s8 + $0x10] sm:$0xff]  ;;  %v1584_v60 = vld [vmem:[%s2546_s8 + $0x18] sm:$0xff] }
 0x274   : > { %v1497_v62 = vmul.f32 1.442695, %v1496_v61  ;;  %v1597_v61 = vpop.permute.xlu1 %1596 }
 0x276   : > { %2101 = vpow2.f32 %v1497_v62  ;;  %v1592_v62 = vpop.permute.xlu0 %1591 }
 0x277   : > { %v2096_v63 = vpop.eup %2095 }
 0x278   : > { %v2098_v0 = vpop.eup %2097  ;;  %v1103_v1 = vsel %vm894_vm3, %v2096_v63, 0.0 }
 0x279   : > { %v1104_v2 = vrot.slane %v1103_v1, 4  ;;  %v905_v3 = vsel %vm894_vm3, %v2098_v0, 0.0 }
 0x27a   : > { %v906_v4 = vrot.slane %v905_v3, 4 }
 0x27b   : > { %v1105_v5 = vadd.f32 %v1104_v2, %v1103_v1 }
 0x27c   : > { %v2100_v6 = vpop.eup %2099  ;;  %v907_v7 = vadd.f32 %v906_v4, %v905_v3  ;;  %v1607_v3 = vpop.permute.xlu1 %1606 }
 0x27d   : > { %v1106_v8 = vrot.slane %v1105_v5, 2  ;;  %v1301_v9 = vsel %vm894_vm3, %v2100_v6, 0.0 }
 0x27e   : > { %v908_v10 = vrot.slane %v907_v7, 2  ;;  %v1302_v11 = vrot.slane %v1301_v9, 4 }
 0x27f   : > { %v1107_v12 = vadd.f32 %v1106_v8, %v1105_v5  ;;  %v1602_v5 = vpop.permute.xlu0 %1601 }
 0x280   : > { %v2102_v13 = vpop.eup %2101  ;;  %v909_v14 = vadd.f32 %v908_v10, %v907_v7  ;;  %v1303_v15 = vadd.f32 %v1302_v11, %v1301_v9 }
 0x281   : > { %v1108_v16 = vrot.slane %v1107_v12, 1  ;;  %v1499_v17 = vsel %vm894_vm3, %v2102_v13, 0.0 }
 0x282   : > { %v910_v18 = vrot.slane %v909_v14, 1  ;;  %v1304_v19 = vrot.slane %v1303_v15, 2  ;;  %v1500_v20 = vrot.slane %v1499_v17, 4 }
 0x283   : > { %v1109_v21 = vadd.f32 %v1108_v16, %v1107_v12 }
 0x284   : > { %v1305_v22 = vadd.f32 %v1304_v19, %v1303_v15  ;;  %v1501_v23 = vadd.f32 %v1500_v20, %v1499_v17  ;;  %v911_v24 = vadd.f32 %v910_v18, %v909_v14 }
 0x285   : > { %2103 = vrcp.f32 %v1109_v21 }
 0x286   : > { %v1306_v25 = vrot.slane %v1305_v22, 1  ;;  %v1502_v26 = vrot.slane %v1501_v23, 2  ;;  %2105 = vrcp.f32 %v911_v24 }
 0x288   : > { %v1503_v27 = vadd.f32 %v1502_v26, %v1501_v23  ;;  %v1307_v28 = vadd.f32 %v1306_v25, %v1305_v22 }
 0x28a   : > { %v1504_v29 = vrot.slane %v1503_v27, 1  ;;  %2107 = vrcp.f32 %v1307_v28 }
 0x28c   : > { %v1505_v30 = vadd.f32 %v1504_v29, %v1503_v27 }
 0x28e   : > { %2109 = vrcp.f32 %v1505_v30 }
 0x28f   : > { %v2104_v31 = vpop.eup %2103 }
 0x290   : > { %v2106_v35 = vpop.eup %2105  ;;  %v1111_v38 = vmul.f32 %v2104_v31, %v2096_v63 }
 0x291   : > { %v913_v36 = vmul.f32 %v2106_v35, %v2098_v0 }
 0x293   : > { %1953 = vmatpush3.msra.mxu1 %v913_v36 }
 0x294   : > { %v2108_v39 = vpop.eup %2107  ;;  %1955 = vmatmul.mubr.msk.f32.vlgmr.msra.gmra.mrb[10].mxu1 %vm819_vm2, %v769_v37  ;;  %1962 = vmatprep.subr.mxu1 %v2192_v33 }
 0x295   : > { %1963 = vmatpush3.msra.mxu1 %v1111_v38  ;;  %1964 = vmatprep.mubr.msk.f32.mxu1 %vm2193_vm1, %v2192_v33  ;;  %v1309_v41 = vmul.f32 %v2108_v39, %v2100_v6 }
 0x296   : > { %1972 = vmatprep.subr.mxu1 %v2192_v33 }
 0x298   : > { %v2110_v43 = vpop.eup %2109  ;;  %1965 = vmatmul.mubr.msk.f32.vlgmr.msra.gmra.mrb[12].mxu1 %vm819_vm2, %v774_v42 }
 0x299   : > { %1973 = vmatpush3.msra.mxu1 %v1309_v41  ;;  %1974 = vmatprep.mubr.msk.f32.mxu1 %vm2193_vm1, %v2192_v33  ;;  %v1507_v56 = vmul.f32 %v2110_v43, %v2102_v13 }
 0x29a   : > { %1982 = vmatprep.subr.mxu1 %v2192_v33 }
 0x29c   : > { %1975 = vmatmul.mubr.msk.f32.vlgmr.msra.gmra.mrb[14].mxu1 %vm819_vm2, %v779_v44 }
 0x29d   : > { %1983 = vmatpush3.msra.mxu1 %v1507_v56  ;;  %1984 = vmatprep.mubr.msk.f32.mxu1 %vm2193_vm1, %v2192_v33 }
 0x2a0   : > { %1985 = vmatmul.mubr.msk.f32.vlgmr.msra.gmra.mrb[16].mxu1 %vm819_vm2, %v784_v54 }
 0x367   : > { %v983_v59 = vpop.f32.mrb[10].mxu1 }
 0x368   : > { %v1956_v47 = vpop.f32.mrb[11].mxu1 }
 0x36b   : > { %v1181_v48 = vpop.f32.mrb[12].mxu1 }
 0x36c   : > { %v2025_v49 = vpack.c.bf16 %v1181_v48, %v983_v59  ;;  %v1966_v50 = vpop.f32.mrb[13].mxu1 }
 0x36e   : > { %2026 = vmatprep.subr.bf16.mxu0 %v2025_v49 }
 0x36f   : > { %v1379_v51 = vpop.f32.mrb[14].mxu1  ;;  %2028 = vmatpush3.bf16.msra.mxu0 %v2025_v49 }
 0x370   : > { %v1976_v33 = vpop.f32.mrb[15].mxu1 }
 0x373   : > { %v1577_v52 = vpop.f32.mrb[16].mxu1 }
 0x374   : > { %v2029_v58 = vpack.c.bf16 %v1577_v52, %v1379_v51  ;;  %v1986_v53 = vpop.f32.mrb[17].mxu1 }
 0x376   : > { %2030 = vmatprep.subr.bf16.mxu0 %v2029_v58 }
 0x377   : > { %2032 = vmatpush3.bf16.msra.mxu0 %v2029_v58 }
 0x37a   : > { %1996 = vmatmul.mubr.msk.f32.vlgmr.msra.gmra.mrb[10].mxu0 %vm439_vm0, %v1582_v55 }
 0x37b   : > { %1998 = vmatprep.mubr.msk.f32.mxu0 %vm439_vm0, %v1583_v57 }
 0x37e   : > { %1999 = vmatmul.mubr.msk.f32.gmra.mrb[12].mxu0 %vm439_vm0, %v1584_v60 }
 0x44d   : > { %v1997_v63 = vpop.f32.mrb[10].mxu0 }
 0x44e   : > { %v1693_v0 = vadd.f32 %v1997_v63, %v1597_v61  ;;  %v1687_v1 = vpop.f32.mrb[11].mxu0 }
 0x44f   : > { %v1688_v2 = vadd.f32 %v1687_v1, %v1592_v62 }
 0x450   : > { %1707 = vst.msk [vmem:[%s389_s12 + $0x8] sm:$0xff] %vm894_vm3, %v1693_v0 }
 0x451   : > { %1706 = vst.msk [vmem:[%s389_s12] sm:$0xff] %vm894_vm3, %v1688_v2  ;;  %v2000_v4 = vpop.f32.mrb[12].mxu0 }
 0x452   : > { %v1703_v6 = vadd.f32 %v2000_v4, %v1607_v3  ;;  %v1697_v7 = vpop.f32.mrb[13].mxu0 }
 0x453   : > { %v1698_v8 = vadd.f32 %v1697_v7, %v1602_v5 }
 0x454   : > { %1709 = vst.msk [vmem:[%s389_s12 + $0x18] sm:$0xff] %vm894_vm3, %v1703_v6 }
 0x455   : > { %1708 = vst.msk [vmem:[%s389_s12 + $0x10] sm:$0xff] %vm894_vm3, %v1698_v8 }
 0x456   : > { %2124 = shalt.err (!%p2121_p5)
}
 0x457   : > { %s2125_s27 = scalar_lea.hbm %s2488_s29, 512  ;;  %s2129_s11 = scalar_lea.hbm %s2548_s10, 1024 }
 0x458   : > { %p2126_p6 = scmp.ne.s32.totalorder %s2488_s29, %s2125_s27  ;;  %p2130_p10 = scmp.lt.u32.totalorder %s2488_s29, %s2548_s10 }
 0x459   : > { %p2131_p11 = scmp.lt.u32.totalorder %s2129_s11, %s2125_s27  ;;  %p2133_p13 = scmp.lt.u32.totalorder %s2125_s27, %s2488_s29 }
 0x45a   : > { %p2127_p7 = pnand %p2126_p6, %p2292_p4 }
 0x45b   : > { %p2132_p12 = por %p2131_p11, %p2130_p10 }
 0x45c   : > { %p2128_p9 = pneg %p2127_p7 }
 0x45d   : > { %p2134_p0 = por %p2133_p13, %p2132_p12 }
 0x45f   : > { %p2135_p1 = pnand %p2134_p0, %p2128_p9 }
 0x461   : > { %2138 = shalt.err (!%p2135_p1)
}
 0x462   : > { %s2195_s17 = smov 128   ;;  %s2196_s26 = smov 8  }
 0x463   : > { %2033 = dma.vmem_to_hbm [thread:$0]  (%p2292_p4), %s2483_s19, 512, %s2488_s29, %s2492_s16, %s2195_s17, %s2195_s17, %s2196_s26  }
 0x464 PF: > { %p2039_p2 = scmp.ge.s32.totalorder %s2189_s18, 2  ;;  %s1740_s21 = sand.u32 1, %s2169_s13  }
 0x465   : > { %s1741_s20 = scalar_lea.sflag [#allocation3], %s1740_s21 }
 0x466   : > { %p2036_p3 = pnand %p2039_p2, %p2299_p8 }
 0x468   : > { %2164 = dma.done.wait (!%p2036_p3), %s1741_s20, 512  }
 0x469   : > { %2166 = vsyncadd (!%p2036_p3), %s1741_s20, 4294966784  ;;  %s23_s18 = sadd.s32 1, %s2189_s18   ;;  %s2558_s22 = sld [smem:[#allocation5_spill]] }
 0x46a   : > { %p20_p5 = scmp.ge.s32.totalorder %s23_s18, 4   ;;  %s2559_s15 = sld [smem:[#allocation8_spill]] }
 0x46b   : > { %s2560_s16 = sld [smem:[#allocation6_spill]]  ;;  %s2561_s17 = sld [smem:[#allocation7_spill]] }
 0x46c   : > { %s2562_s13 = smov %s2173_s14  ;;  %22 = sbr.rel (!%p20_p5) target bundleno = 4 (0x4), region = 98 }
 0x46f   : > { %s2563_s14 = smov %s2558_s22 }
 0x473   :  { %1746 = vsyncpa [#allocation3], 1 }
 0x474   :  { %1748 = vsyncpa [#allocation3 + $0x1], 1 }

</bundles_post_ra>
